<compile_context>
chip_gen: v5e
topology: v5e:2x2
jax: 0.10.0
libtpu: 0.0.40
codegen_flags: <defaults>
</compile_context>

<pallas_src>
import functools
import math

import jax
import jax.numpy as jnp
import numpy as np
from jax.experimental import pallas as pl


_LANE = 128  # per-head padded width and output lane padding


def _cross_modal_attn_kernel(B, Lq, Lk, num_heads,
                             x_ref, w_ref, b_ref, wo_ref, bo_ref, out_ref):
    f32 = jnp.float32
    HDP = _LANE
    NQ = num_heads * HDP
    Mq = B * Lq

    # Fused Q/K/V projection: one MXU push on the block-diagonal folded weight.
    proj = jnp.dot(x_ref[...].astype(f32), w_ref[...],
                   preferred_element_type=f32) + b_ref[...]      # (B*(Lq+Lk), 3*NQ)

    qp = proj[:Mq, :NQ]              # (B*Lq, nh*128)  Q rows / Q columns
    kp = proj[Mq:, NQ:2 * NQ]        # (B*Lk, nh*128)  K rows / K columns
    vp = proj[Mq:, 2 * NQ:]          # (B*Lk, nh*128)  V rows / V columns

    dot_nt = (((1,), (1,)), ((), ()))                            # a @ b.T

    # --- Scores for all (b, h) pairs; padded lanes are zero so the 128-deep
    # contraction equals the true head_dim contraction. ---
    s_tiles = []
    for b in range(B):                       # static unroll: tiny B
        for h in range(num_heads):           # static unroll: tiny nh
            qh = qp[b * Lq:(b + 1) * Lq, h * HDP:(h + 1) * HDP]  # (Lq, 128)
            kh = kp[b * Lk:(b + 1) * Lk, h * HDP:(h + 1) * HDP]  # (Lk, 128)
            s_tiles.append(jax.lax.dot_general(qh, kh, dot_nt,
                                               preferred_element_type=f32))
    s = jnp.concatenate(s_tiles, axis=0)                         # (B*nh*Lq, Lk)

    # --- One batched softmax over all (b, h, q) rows. ---
    s = s - jnp.max(s, axis=-1, keepdims=True)
    p = jnp.exp(s)
    p = p * pl.reciprocal(jnp.sum(p, axis=-1, keepdims=True), approx=False)
    # TODO(synk): attention dropout (p=0.5) is inactive at inference; not applied.

    # --- p @ V per (b, h); lane-concat heads (128-aligned) and do ONE output
    # projection matmul + one bias add. ---
    pv_rows = []
    for b in range(B):
        pv_heads = []
        for h in range(num_heads):
            r = (b * num_heads + h) * Lq
            p_bh = p[r:r + Lq, :]                                # (Lq, Lk)
            vh = vp[b * Lk:(b + 1) * Lk, h * HDP:(h + 1) * HDP]  # (Lk, 128)
            pv_heads.append(jnp.dot(p_bh, vh, preferred_element_type=f32))
        pv_rows.append(jnp.concatenate(pv_heads, axis=1))        # (Lq, nh*128)
    pv = jnp.concatenate(pv_rows, axis=0)                        # (B*Lq, nh*128)

    out = jnp.dot(pv, wo_ref[...], preferred_element_type=f32) + bo_ref[...]
    out_ref[...] = out.astype(out_ref.dtype)                     # (B*Lq, Hp) lane-dense


def _fold_weights(params, num_heads):
    """Host-side algebraic folding + per-head 128-lane padding + block weight."""
    H = params["wq"].shape[0]
    hd = H // num_heads
    scale = 1.0 / math.sqrt(hd)
    Dv = params["vis_w"].shape[0]
    Da = params["aud_w"].shape[0]
    HDP = _LANE
    NQ = num_heads * HDP

    # Fold input Linears into MHA in-proj; fold 1/sqrt(hd) into Q.
    wq = (params["vis_w"] @ params["wq"]) * scale                 # (Dv, H)
    bq = (params["vis_b"] @ params["wq"] + params["bq"]) * scale  # (1, H)
    wk = params["aud_w"] @ params["wk"]                           # (Da, H)
    bk = params["aud_b"] @ params["wk"] + params["bk"]
    wv = params["aud_w"] @ params["wv"]
    bv = params["aud_b"] @ params["wv"] + params["bv"]

    def pad_head_lanes(a):  # (R, H) -> (R, nh*128), each head in its own block
        R = a.shape[0]
        a3 = a.reshape(R, num_heads, hd)
        a3 = jnp.pad(a3, ((0, 0), (0, 0), (0, HDP - hd)))
        return a3.reshape(R, NQ)

    wq_p, wk_p, wv_p = pad_head_lanes(wq), pad_head_lanes(wk), pad_head_lanes(wv)
    bq_p, bk_p, bv_p = pad_head_lanes(bq), pad_head_lanes(bk), pad_head_lanes(bv)

    # Block-diagonal fused projection weight: rows [vis | aud], cols [Q | K | V].
    W_block = jnp.zeros((Dv + Da, 3 * NQ), jnp.float32)
    W_block = W_block.at[:Dv, :NQ].set(wq_p)
    W_block = W_block.at[Dv:, NQ:2 * NQ].set(wk_p)
    W_block = W_block.at[Dv:, 2 * NQ:].set(wv_p)
    b_block = jnp.concatenate([bq_p, bk_p, bv_p], axis=1)         # (1, 3*NQ)

    # Output projection: per-head row blocks padded to 128, columns to Hp.
    Hp = ((H + _LANE - 1) // _LANE) * _LANE
    wo3 = params["wo"].reshape(num_heads, hd, H)
    wo3 = jnp.pad(wo3, ((0, 0), (0, HDP - hd), (0, Hp - H)))
    wo_pad = wo3.reshape(NQ, Hp)                                  # (nh*128, Hp)
    bo_pad = jnp.pad(params["bo"], ((0, 0), (0, Hp - H)))         # (1, Hp)

    return W_block, b_block, wo_pad, bo_pad


@functools.partial(jax.jit, static_argnames=("num_heads",))
def cross_modal_attention(visual, audio, params, num_heads=4):
    B, Lq, Dv = visual.shape
    Bk, Lk, Da = audio.shape
    assert B == Bk
    H = params["vis_w"].shape[1]
    assert H % num_heads == 0

    W_block, b_block, wo_pad, bo_pad = _fold_weights(params, num_heads)
    Hp = wo_pad.shape[1]

    # Row-stack the two modalities so one matmul does both projections.
    vis2d = visual.reshape(B * Lq, Dv)
    aud2d = audio.reshape(B * Lk, Da)
    x = jnp.concatenate(
        [jnp.pad(vis2d, ((0, 0), (0, Da))),
         jnp.pad(aud2d, ((0, 0), (Dv, 0)))], axis=0)              # (B*(Lq+Lk), Dv+Da)

    kernel = functools.partial(_cross_modal_attn_kernel, B, Lq, Lk, num_heads)

    # Single gridless invocation: all operands are whole-array VMEM refs and
    # fit trivially; per-grid-step overhead would dominate at these shapes.
    out = pl.pallas_call(
        kernel,
        out_shape=jax.ShapeDtypeStruct((B * Lq, Hp), visual.dtype),
    )(x, W_block, b_block, wo_pad, bo_pad)

    return out[:, :H].reshape(B, Lq, H)


def init_params(key, vis_dim, aud_dim, hidden_dim):
    """Deterministic parameter init (shapes match the PyTorch module)."""
    ks = jax.random.split(key, 8)

    def xavier(k, shape):  # shape = (fan_in, fan_out)
        limit = math.sqrt(6.0 / (shape[0] + shape[1]))
        return jax.random.uniform(k, shape, jnp.float32, -limit, limit)

    H = hidden_dim
    params = {
        "vis_w": xavier(ks[0], (vis_dim, H)),
        "vis_b": jax.random.uniform(ks[1], (1, H), jnp.float32, -0.1, 0.1),
        "aud_w": xavier(ks[2], (aud_dim, H)),
        "aud_b": jax.random.uniform(ks[3], (1, H), jnp.float32, -0.1, 0.1),
        # MHA in_proj (3H, H) split into q/k/v, stored transposed as (H, H) each
        "wq": xavier(ks[4], (H, H)),
        "wk": xavier(ks[5], (H, H)),
        "wv": xavier(ks[6], (H, H)),
        "bq": jnp.zeros((1, H), jnp.float32),
        "bk": jnp.zeros((1, H), jnp.float32),
        "bv": jnp.zeros((1, H), jnp.float32),
        # out_proj
        "wo": xavier(ks[7], (H, H)),
        "bo": jnp.zeros((1, H), jnp.float32),
    }
    return params


def reference(visual, audio, params, num_heads=4):
    """Pure-JAX reference mirroring PyTorch semantics (eval mode), unfolded."""
    vp = visual @ params["vis_w"] + params["vis_b"][0]
    ap = audio @ params["aud_w"] + params["aud_b"][0]
    q = vp @ params["wq"] + params["bq"][0]
    k = ap @ params["wk"] + params["bk"][0]
    v = ap @ params["wv"] + params["bv"][0]
    B, Lq, H = q.shape
    Lk = k.shape[1]
    hd = H // num_heads
    qh = q.reshape(B, Lq, num_heads, hd).transpose(0, 2, 1, 3)
    kh = k.reshape(B, Lk, num_heads, hd).transpose(0, 2, 1, 3)
    vh = v.reshape(B, Lk, num_heads, hd).transpose(0, 2, 1, 3)
    s = jnp.einsum("bhqd,bhkd->bhqk", qh, kh) / math.sqrt(hd)
    p = jax.nn.softmax(s, axis=-1)
    o = jnp.einsum("bhqk,bhkd->bhqd", p, vh)
    o = o.transpose(0, 2, 1, 3).reshape(B, Lq, H)
    return o @ params["wo"] + params["bo"][0]


if __name__ == "__main__":
    B, Lq, Lk = 2, 8, 8
    vis_dim, aud_dim, hidden_dim = 16, 8, 32

    key = jax.random.PRNGKey(0)
    k_vis, k_aud, k_par = jax.random.split(key, 3)
    visual = jax.random.normal(k_vis, (B, Lq, vis_dim), jnp.float32)
    audio = jax.random.normal(k_aud, (B, Lk, aud_dim), jnp.float32)
    params = init_params(k_par, vis_dim, aud_dim, hidden_dim)

    out = cross_modal_attention(visual, audio, params)
    out = jax.block_until_ready(out)

    ref = reference(visual, audio, params)
    # Tolerance covers host-side weight folding (fp reassociation); the softmax
    # reciprocal is exact (approx=False).
    np.testing.assert_allclose(np.asarray(out), np.asarray(ref), rtol=2e-3, atol=2e-3)

    print("KERNEL_OK")
</pallas_src>

<mosaic_0001>
module attributes {stable_mosaic.version = 11 : i64} {
  func.func @_cross_modal_attn_kernel(%arg0: memref<32x24xf32, #tpu.memory_space<vmem>>, %arg1: memref<24x1536xf32, #tpu.memory_space<vmem>>, %arg2: memref<1x1536xf32, #tpu.memory_space<vmem>>, %arg3: memref<512x128xf32, #tpu.memory_space<vmem>>, %arg4: memref<1x128xf32, #tpu.memory_space<vmem>>, %arg5: memref<16x128xf32, #tpu.memory_space<vmem>>) attributes {dimension_semantics = [], scalar_prefetch = 0 : i64, scratch_operands = 0 : i64, tpu.core_type = #tpu.core_type<tc>} {
    %c0 = arith.constant 0 : index
    %c0_0 = arith.constant 0 : index
    %0 = vector.load %arg0[%c0, %c0_0] : memref<32x24xf32, #tpu.memory_space<vmem>>, vector<32x24xf32>
    %c0_1 = arith.constant 0 : index
    %c0_2 = arith.constant 0 : index
    %1 = vector.load %arg1[%c0_1, %c0_2] : memref<24x1536xf32, #tpu.memory_space<vmem>>, vector<24x1536xf32>
    %cst = arith.constant dense<0.000000e+00> : vector<32x1536xf32>
    %2 = tpu.matmul %0, %1, %cst {dimension_numbers = #tpu.dot_dimension_numbers<[1], [0], [0], [1], [0, 0, 1, 1], [], []>} : vector<32x24xf32>, vector<24x1536xf32>, vector<32x1536xf32> -> vector<32x1536xf32>
    %c0_3 = arith.constant 0 : index
    %c0_4 = arith.constant 0 : index
    %3 = vector.load %arg2[%c0_3, %c0_4] : memref<1x1536xf32, #tpu.memory_space<vmem>>, vector<1x1536xf32>
    %4 = vector.broadcast %3 : vector<1x1536xf32> to vector<32x1536xf32>
    %5 = arith.addf %2, %4 : vector<32x1536xf32>
    %6 = vector.extract_strided_slice %5 {offsets = [0, 0], sizes = [16, 512], strides = [1, 1]} : vector<32x1536xf32> to vector<16x512xf32>
    %7 = vector.extract_strided_slice %5 {offsets = [16, 512], sizes = [16, 512], strides = [1, 1]} : vector<32x1536xf32> to vector<16x512xf32>
    %8 = vector.extract_strided_slice %5 {offsets = [16, 1024], sizes = [16, 512], strides = [1, 1]} : vector<32x1536xf32> to vector<16x512xf32>
    %9 = vector.extract_strided_slice %6 {offsets = [0, 0], sizes = [8, 128], strides = [1, 1]} : vector<16x512xf32> to vector<8x128xf32>
    %10 = vector.extract_strided_slice %7 {offsets = [0, 0], sizes = [8, 128], strides = [1, 1]} : vector<16x512xf32> to vector<8x128xf32>
    %cst_5 = arith.constant dense<0.000000e+00> : vector<8x8xf32>
    %11 = tpu.matmul %9, %10, %cst_5 {dimension_numbers = #tpu.dot_dimension_numbers<[1], [1], [0], [0], [0, 0, 1, 0], [], []>} : vector<8x128xf32>, vector<8x128xf32>, vector<8x8xf32> -> vector<8x8xf32>
    %12 = vector.extract_strided_slice %6 {offsets = [0, 128], sizes = [8, 128], strides = [1, 1]} : vector<16x512xf32> to vector<8x128xf32>
    %13 = vector.extract_strided_slice %7 {offsets = [0, 128], sizes = [8, 128], strides = [1, 1]} : vector<16x512xf32> to vector<8x128xf32>
    %cst_6 = arith.constant dense<0.000000e+00> : vector<8x8xf32>
    %14 = tpu.matmul %12, %13, %cst_6 {dimension_numbers = #tpu.dot_dimension_numbers<[1], [1], [0], [0], [0, 0, 1, 0], [], []>} : vector<8x128xf32>, vector<8x128xf32>, vector<8x8xf32> -> vector<8x8xf32>
    %15 = vector.extract_strided_slice %6 {offsets = [0, 256], sizes = [8, 128], strides = [1, 1]} : vector<16x512xf32> to vector<8x128xf32>
    %16 = vector.extract_strided_slice %7 {offsets = [0, 256], sizes = [8, 128], strides = [1, 1]} : vector<16x512xf32> to vector<8x128xf32>
    %cst_7 = arith.constant dense<0.000000e+00> : vector<8x8xf32>
    %17 = tpu.matmul %15, %16, %cst_7 {dimension_numbers = #tpu.dot_dimension_numbers<[1], [1], [0], [0], [0, 0, 1, 0], [], []>} : vector<8x128xf32>, vector<8x128xf32>, vector<8x8xf32> -> vector<8x8xf32>
    %18 = vector.extract_strided_slice %6 {offsets = [0, 384], sizes = [8, 128], strides = [1, 1]} : vector<16x512xf32> to vector<8x128xf32>
    %19 = vector.extract_strided_slice %7 {offsets = [0, 384], sizes = [8, 128], strides = [1, 1]} : vector<16x512xf32> to vector<8x128xf32>
    %cst_8 = arith.constant dense<0.000000e+00> : vector<8x8xf32>
    %20 = tpu.matmul %18, %19, %cst_8 {dimension_numbers = #tpu.dot_dimension_numbers<[1], [1], [0], [0], [0, 0, 1, 0], [], []>} : vector<8x128xf32>, vector<8x128xf32>, vector<8x8xf32> -> vector<8x8xf32>
    %21 = vector.extract_strided_slice %6 {offsets = [8, 0], sizes = [8, 128], strides = [1, 1]} : vector<16x512xf32> to vector<8x128xf32>
    %22 = vector.extract_strided_slice %7 {offsets = [8, 0], sizes = [8, 128], strides = [1, 1]} : vector<16x512xf32> to vector<8x128xf32>
    %cst_9 = arith.constant dense<0.000000e+00> : vector<8x8xf32>
    %23 = tpu.matmul %21, %22, %cst_9 {dimension_numbers = #tpu.dot_dimension_numbers<[1], [1], [0], [0], [0, 0, 1, 0], [], []>} : vector<8x128xf32>, vector<8x128xf32>, vector<8x8xf32> -> vector<8x8xf32>
    %24 = vector.extract_strided_slice %6 {offsets = [8, 128], sizes = [8, 128], strides = [1, 1]} : vector<16x512xf32> to vector<8x128xf32>
    %25 = vector.extract_strided_slice %7 {offsets = [8, 128], sizes = [8, 128], strides = [1, 1]} : vector<16x512xf32> to vector<8x128xf32>
    %cst_10 = arith.constant dense<0.000000e+00> : vector<8x8xf32>
    %26 = tpu.matmul %24, %25, %cst_10 {dimension_numbers = #tpu.dot_dimension_numbers<[1], [1], [0], [0], [0, 0, 1, 0], [], []>} : vector<8x128xf32>, vector<8x128xf32>, vector<8x8xf32> -> vector<8x8xf32>
    %27 = vector.extract_strided_slice %6 {offsets = [8, 256], sizes = [8, 128], strides = [1, 1]} : vector<16x512xf32> to vector<8x128xf32>
    %28 = vector.extract_strided_slice %7 {offsets = [8, 256], sizes = [8, 128], strides = [1, 1]} : vector<16x512xf32> to vector<8x128xf32>
    %cst_11 = arith.constant dense<0.000000e+00> : vector<8x8xf32>
    %29 = tpu.matmul %27, %28, %cst_11 {dimension_numbers = #tpu.dot_dimension_numbers<[1], [1], [0], [0], [0, 0, 1, 0], [], []>} : vector<8x128xf32>, vector<8x128xf32>, vector<8x8xf32> -> vector<8x8xf32>
    %30 = vector.extract_strided_slice %6 {offsets = [8, 384], sizes = [8, 128], strides = [1, 1]} : vector<16x512xf32> to vector<8x128xf32>
    %31 = vector.extract_strided_slice %7 {offsets = [8, 384], sizes = [8, 128], strides = [1, 1]} : vector<16x512xf32> to vector<8x128xf32>
    %cst_12 = arith.constant dense<0.000000e+00> : vector<8x8xf32>
    %32 = tpu.matmul %30, %31, %cst_12 {dimension_numbers = #tpu.dot_dimension_numbers<[1], [1], [0], [0], [0, 0, 1, 0], [], []>} : vector<8x128xf32>, vector<8x128xf32>, vector<8x8xf32> -> vector<8x8xf32>
    %33 = tpu.concatenate %11, %14, %17, %20, %23, %26, %29, %32 in 0 : vector<8x8xf32>, vector<8x8xf32>, vector<8x8xf32>, vector<8x8xf32>, vector<8x8xf32>, vector<8x8xf32>, vector<8x8xf32>, vector<8x8xf32> -> vector<64x8xf32>
    %cst_13 = arith.constant dense<0xFF800000> : vector<64xf32>
    %34 = vector.multi_reduction <maximumf>, %33, %cst_13 [1] : vector<64x8xf32> to vector<64xf32>
    %35 = vector.shape_cast %34 : vector<64xf32> to vector<64x1xf32>
    %36 = vector.broadcast %35 : vector<64x1xf32> to vector<64x8xf32>
    %37 = arith.subf %33, %36 : vector<64x8xf32>
    %38 = math.exp %37 : vector<64x8xf32>
    %cst_14 = arith.constant dense<0.000000e+00> : vector<64xf32>
    %39 = vector.multi_reduction <add>, %38, %cst_14 [1] : vector<64x8xf32> to vector<64xf32>
    %40 = vector.shape_cast %39 : vector<64xf32> to vector<64x1xf32>
    %41 = tpu.reciprocal %40 : vector<64x1xf32> -> vector<64x1xf32>
    %42 = vector.broadcast %41 : vector<64x1xf32> to vector<64x8xf32>
    %43 = arith.mulf %38, %42 : vector<64x8xf32>
    %44 = vector.extract_strided_slice %43 {offsets = [0, 0], sizes = [8, 8], strides = [1, 1]} : vector<64x8xf32> to vector<8x8xf32>
    %45 = vector.extract_strided_slice %8 {offsets = [0, 0], sizes = [8, 128], strides = [1, 1]} : vector<16x512xf32> to vector<8x128xf32>
    %cst_15 = arith.constant dense<0.000000e+00> : vector<8x128xf32>
    %46 = tpu.matmul %44, %45, %cst_15 {dimension_numbers = #tpu.dot_dimension_numbers<[1], [0], [0], [1], [0, 0, 1, 1], [], []>} : vector<8x8xf32>, vector<8x128xf32>, vector<8x128xf32> -> vector<8x128xf32>
    %47 = vector.extract_strided_slice %43 {offsets = [8, 0], sizes = [8, 8], strides = [1, 1]} : vector<64x8xf32> to vector<8x8xf32>
    %48 = vector.extract_strided_slice %8 {offsets = [0, 128], sizes = [8, 128], strides = [1, 1]} : vector<16x512xf32> to vector<8x128xf32>
    %cst_16 = arith.constant dense<0.000000e+00> : vector<8x128xf32>
    %49 = tpu.matmul %47, %48, %cst_16 {dimension_numbers = #tpu.dot_dimension_numbers<[1], [0], [0], [1], [0, 0, 1, 1], [], []>} : vector<8x8xf32>, vector<8x128xf32>, vector<8x128xf32> -> vector<8x128xf32>
    %50 = vector.extract_strided_slice %43 {offsets = [16, 0], sizes = [8, 8], strides = [1, 1]} : vector<64x8xf32> to vector<8x8xf32>
    %51 = vector.extract_strided_slice %8 {offsets = [0, 256], sizes = [8, 128], strides = [1, 1]} : vector<16x512xf32> to vector<8x128xf32>
    %cst_17 = arith.constant dense<0.000000e+00> : vector<8x128xf32>
    %52 = tpu.matmul %50, %51, %cst_17 {dimension_numbers = #tpu.dot_dimension_numbers<[1], [0], [0], [1], [0, 0, 1, 1], [], []>} : vector<8x8xf32>, vector<8x128xf32>, vector<8x128xf32> -> vector<8x128xf32>
    %53 = vector.extract_strided_slice %43 {offsets = [24, 0], sizes = [8, 8], strides = [1, 1]} : vector<64x8xf32> to vector<8x8xf32>
    %54 = vector.extract_strided_slice %8 {offsets = [0, 384], sizes = [8, 128], strides = [1, 1]} : vector<16x512xf32> to vector<8x128xf32>
    %cst_18 = arith.constant dense<0.000000e+00> : vector<8x128xf32>
    %55 = tpu.matmul %53, %54, %cst_18 {dimension_numbers = #tpu.dot_dimension_numbers<[1], [0], [0], [1], [0, 0, 1, 1], [], []>} : vector<8x8xf32>, vector<8x128xf32>, vector<8x128xf32> -> vector<8x128xf32>
    %56 = tpu.concatenate %46, %49, %52, %55 in 1 : vector<8x128xf32>, vector<8x128xf32>, vector<8x128xf32>, vector<8x128xf32> -> vector<8x512xf32>
    %57 = vector.extract_strided_slice %43 {offsets = [32, 0], sizes = [8, 8], strides = [1, 1]} : vector<64x8xf32> to vector<8x8xf32>
    %58 = vector.extract_strided_slice %8 {offsets = [8, 0], sizes = [8, 128], strides = [1, 1]} : vector<16x512xf32> to vector<8x128xf32>
    %cst_19 = arith.constant dense<0.000000e+00> : vector<8x128xf32>
    %59 = tpu.matmul %57, %58, %cst_19 {dimension_numbers = #tpu.dot_dimension_numbers<[1], [0], [0], [1], [0, 0, 1, 1], [], []>} : vector<8x8xf32>, vector<8x128xf32>, vector<8x128xf32> -> vector<8x128xf32>
    %60 = vector.extract_strided_slice %43 {offsets = [40, 0], sizes = [8, 8], strides = [1, 1]} : vector<64x8xf32> to vector<8x8xf32>
    %61 = vector.extract_strided_slice %8 {offsets = [8, 128], sizes = [8, 128], strides = [1, 1]} : vector<16x512xf32> to vector<8x128xf32>
    %cst_20 = arith.constant dense<0.000000e+00> : vector<8x128xf32>
    %62 = tpu.matmul %60, %61, %cst_20 {dimension_numbers = #tpu.dot_dimension_numbers<[1], [0], [0], [1], [0, 0, 1, 1], [], []>} : vector<8x8xf32>, vector<8x128xf32>, vector<8x128xf32> -> vector<8x128xf32>
    %63 = vector.extract_strided_slice %43 {offsets = [48, 0], sizes = [8, 8], strides = [1, 1]} : vector<64x8xf32> to vector<8x8xf32>
    %64 = vector.extract_strided_slice %8 {offsets = [8, 256], sizes = [8, 128], strides = [1, 1]} : vector<16x512xf32> to vector<8x128xf32>
    %cst_21 = arith.constant dense<0.000000e+00> : vector<8x128xf32>
    %65 = tpu.matmul %63, %64, %cst_21 {dimension_numbers = #tpu.dot_dimension_numbers<[1], [0], [0], [1], [0, 0, 1, 1], [], []>} : vector<8x8xf32>, vector<8x128xf32>, vector<8x128xf32> -> vector<8x128xf32>
    %66 = vector.extract_strided_slice %43 {offsets = [56, 0], sizes = [8, 8], strides = [1, 1]} : vector<64x8xf32> to vector<8x8xf32>
    %67 = vector.extract_strided_slice %8 {offsets = [8, 384], sizes = [8, 128], strides = [1, 1]} : vector<16x512xf32> to vector<8x128xf32>
    %cst_22 = arith.constant dense<0.000000e+00> : vector<8x128xf32>
    %68 = tpu.matmul %66, %67, %cst_22 {dimension_numbers = #tpu.dot_dimension_numbers<[1], [0], [0], [1], [0, 0, 1, 1], [], []>} : vector<8x8xf32>, vector<8x128xf32>, vector<8x128xf32> -> vector<8x128xf32>
    %69 = tpu.concatenate %59, %62, %65, %68 in 1 : vector<8x128xf32>, vector<8x128xf32>, vector<8x128xf32>, vector<8x128xf32> -> vector<8x512xf32>
    %70 = tpu.concatenate %56, %69 in 0 : vector<8x512xf32>, vector<8x512xf32> -> vector<16x512xf32>
    %c0_23 = arith.constant 0 : index
    %c0_24 = arith.constant 0 : index
    %71 = vector.load %arg3[%c0_23, %c0_24] : memref<512x128xf32, #tpu.memory_space<vmem>>, vector<512x128xf32>
    %cst_25 = arith.constant dense<0.000000e+00> : vector<16x128xf32>
    %72 = tpu.matmul %70, %71, %cst_25 {dimension_numbers = #tpu.dot_dimension_numbers<[1], [0], [0], [1], [0, 0, 1, 1], [], []>} : vector<16x512xf32>, vector<512x128xf32>, vector<16x128xf32> -> vector<16x128xf32>
    %c0_26 = arith.constant 0 : index
    %c0_27 = arith.constant 0 : index
    %73 = vector.load %arg4[%c0_26, %c0_27] : memref<1x128xf32, #tpu.memory_space<vmem>>, vector<1x128xf32>
    %74 = vector.broadcast %73 : vector<1x128xf32> to vector<16x128xf32>
    %75 = arith.addf %72, %74 : vector<16x128xf32>
    %c0_28 = arith.constant 0 : index
    %c0_29 = arith.constant 0 : index
    %76 = vector.load %arg5[%c0_28, %c0_29] : memref<16x128xf32, #tpu.memory_space<vmem>>, vector<16x128xf32>
    tpu.vector_store %arg5[%c0_28, %c0_29], %75 {strides = array<i32>} : memref<16x128xf32, #tpu.memory_space<vmem>>, vector<16x128xf32>,
    return
  }
}

</mosaic_0001>

<bundles_post_ra>
// kernel: cross_modal_attention.1
= control target key start
LH: loop header
LB: loop body
LE: loop exit
PB: predicated region body
PF: predicated region fallthrough
CT: control target
= control target key end

     0   :  { %vm88_vm0 = vcmask 195584   ;;  %vm585_vm1 = vcmask 64512   ;;  %s1826_s1 = inlined_call_operand.vmem [shape: f32[24,1536], index: 1, kind: input, shape index: {}]   ;;  %s1827_s0 = inlined_call_operand.vmem [shape: f32[32,24], index: 0, kind: input, shape index: {}]   ;;  %s1828_s2 = inlined_call_operand.vmem [shape: f32[1,1536], index: 2, kind: input, shape index: {}]   ;;  %s1829_s3 = inlined_call_operand.vmem [shape: f32[512,128], index: 3, kind: input, shape index: {}]   ;;  %s1830_s4 = inlined_call_operand.vmem [shape: f32[1,128], index: 4, kind: input, shape index: {}]   ;;  %s1831_s5 = inlined_call_operand.vmem [shape: f32[16,128], index: 5, kind: output, shape index: {}]  }
   0x1   :  { %v48_v0 = vld [vmem:[%s1826_s1 + $0xc0] sm:$0xff]  ;;  %v49_v1 = vld [vmem:[%s1826_s1 + $0xc8] sm:$0xff]  ;;  %v50_v2 = vld [vmem:[%s1826_s1 + $0xd0] sm:$0xff] }
   0x2   :  { %114 = vmatpush.msra.mxu0 %v48_v0  ;;  %141 = vmatpush.msra.mxu1 %v49_v1  ;;  %v51_v3 = vld [vmem:[%s1826_s1 + $0xd8] sm:$0xff]  ;;  %v36_v4 = vld [vmem:[%s1826_s1 + $0x60] sm:$0xff]  ;;  %v37_v5 = vld [vmem:[%s1826_s1 + $0x68] sm:$0xff] }
   0x3   :  { %168 = vmatpush.msra.mxu2 %v50_v2  ;;  %195 = vmatpush.msra.mxu3 %v51_v3  ;;  %v38_v6 = vld [vmem:[%s1826_s1 + $0x70] sm:$0xff]  ;;  %v39_v7 = vld [vmem:[%s1826_s1 + $0x78] sm:$0xff]  ;;  %v24_v8 = vld [vmem:[%s1826_s1] sm:$0xff] }
   0x4   :  { %115 = vmatpush.msra.mxu0 %v36_v4  ;;  %142 = vmatpush.msra.mxu1 %v37_v5  ;;  %v25_v9 = vld [vmem:[%s1826_s1 + $0x8] sm:$0xff]  ;;  %v26_v10 = vld [vmem:[%s1826_s1 + $0x10] sm:$0xff]  ;;  %v27_v11 = vld [vmem:[%s1826_s1 + $0x18] sm:$0xff] }
   0x5   :  { %169 = vmatpush.msra.mxu2 %v38_v6  ;;  %196 = vmatpush.msra.mxu3 %v39_v7  ;;  %v1286_v12 = vld [vmem:[%s1827_s0] sm:$0xff]  ;;  %v53_v14 = vld [vmem:[%s1826_s1 + $0xe8] sm:$0xff]  ;;  %v54_v15 = vld [vmem:[%s1826_s1 + $0xf0] sm:$0xff] }
   0x6   :  { %116 = vmatpush.msra.mxu0 %v24_v8  ;;  %143 = vmatpush.msra.mxu1 %v25_v9  ;;  %v52_v13 = vld [vmem:[%s1826_s1 + $0xe0] sm:$0xff]  ;;  %v55_v16 = vld [vmem:[%s1826_s1 + $0xf8] sm:$0xff]  ;;  %v41_v18 = vld [vmem:[%s1826_s1 + $0x88] sm:$0xff] }
   0x7   :  { %170 = vmatpush.msra.mxu2 %v26_v10  ;;  %197 = vmatpush.msra.mxu3 %v27_v11  ;;  %v40_v17 = vld [vmem:[%s1826_s1 + $0x80] sm:$0xff]  ;;  %v42_v19 = vld [vmem:[%s1826_s1 + $0x90] sm:$0xff]  ;;  %v43_v20 = vld [vmem:[%s1826_s1 + $0x98] sm:$0xff] }
   0x8   :  { %1128 = vmatmul.msk.f32.vlgmr.msra.gmra.mxu0 %vm88_vm0, %v1286_v12  ;;  %1132 = vmatmul.msk.f32.vlgmr.msra.gmra.mxu1 %vm88_vm0, %v1286_v12  ;;  %v28_v21 = vld [vmem:[%s1826_s1 + $0x20] sm:$0xff]  ;;  %v29_v22 = vld [vmem:[%s1826_s1 + $0x28] sm:$0xff]  ;;  %v30_v23 = vld [vmem:[%s1826_s1 + $0x30] sm:$0xff] }
   0x9   :  { %1136 = vmatmul.msk.f32.vlgmr.msra.gmra.mxu2 %vm88_vm0, %v1286_v12  ;;  %1140 = vmatmul.msk.f32.vlgmr.msra.gmra.mxu3 %vm88_vm0, %v1286_v12  ;;  %v31_v24 = vld [vmem:[%s1826_s1 + $0x38] sm:$0xff]  ;;  %v1335_v25 = vld [vmem:[%s1827_s0 + $0x8] sm:$0xff]  ;;  %v1348_v26 = vld [vmem:[%s1827_s0 + $0x10] sm:$0xff] }
   0xa   :  { %222 = vmatpush.msrb.mxu0 %v52_v13  ;;  %249 = vmatpush.msrb.mxu1 %v53_v14  ;;  %v1361_v27 = vld [vmem:[%s1827_s0 + $0x18] sm:$0xff]  ;;  %v56_v28 = vld [vmem:[%s1826_s1 + $0x100] sm:$0xff]  ;;  %v57_v29 = vld [vmem:[%s1826_s1 + $0x108] sm:$0xff] }
   0xb   :  { %276 = vmatpush.msrb.mxu2 %v54_v15  ;;  %303 = vmatpush.msrb.mxu3 %v55_v16  ;;  %v44_v30 = vld [vmem:[%s1826_s1 + $0xa0] sm:$0xff]  ;;  %v45_v31 = vld [vmem:[%s1826_s1 + $0xa8] sm:$0xff]  ;;  %v58_v34 = vld [vmem:[%s1826_s1 + $0x110] sm:$0xff] }
   0xc   :  { %223 = vmatpush.msrb.mxu0 %v40_v17  ;;  %250 = vmatpush.msrb.mxu1 %v41_v18  ;;  %v32_v32 = vld [vmem:[%s1826_s1 + $0x40] sm:$0xff]  ;;  %v33_v33 = vld [vmem:[%s1826_s1 + $0x48] sm:$0xff]  ;;  %v59_v35 = vld [vmem:[%s1826_s1 + $0x118] sm:$0xff] }
   0xd   :  { %277 = vmatpush.msrb.mxu2 %v42_v19  ;;  %304 = vmatpush.msrb.mxu3 %v43_v20  ;;  %v46_v36 = vld [vmem:[%s1826_s1 + $0xb0] sm:$0xff]  ;;  %v47_v37 = vld [vmem:[%s1826_s1 + $0xb8] sm:$0xff]  ;;  %v60_v62 = vld [vmem:[%s1828_s2] sm:$0xff] }
   0xe   :  { %224 = vmatpush.msrb.mxu0 %v28_v21  ;;  %251 = vmatpush.msrb.mxu1 %v29_v22  ;;  %v34_v38 = vld [vmem:[%s1826_s1 + $0x50] sm:$0xff]  ;;  %v35_v39 = vld [vmem:[%s1826_s1 + $0x58] sm:$0xff]  ;;  %v68_v63 = vperm.slane %v60_v62, 4  ;;  %v69_v0 = vperm.slane %v60_v62, 5  ;;  %v64_v3 = vperm.slane %v60_v62, 0  ;;  %v65_v4 = vperm.slane %v60_v62, 1 }
   0xf   :  { %278 = vmatpush.msrb.mxu2 %v30_v23  ;;  %305 = vmatpush.msrb.mxu3 %v31_v24  ;;  %v70_v11 = vperm.slane %v60_v62, 6  ;;  %v66_v13 = vperm.slane %v60_v62, 2  ;;  %v67_v14 = vperm.slane %v60_v62, 3 }
  0x10   :  { %1129 = vmatmul.msk.f32.gmra.mxu0 %vm88_vm0, %v1335_v25  ;;  %1133 = vmatmul.msk.f32.gmra.mxu1 %vm88_vm0, %v1335_v25 }
  0x11   :  { %1137 = vmatmul.msk.f32.gmra.mxu2 %vm88_vm0, %v1335_v25  ;;  %1141 = vmatmul.msk.f32.gmra.mxu3 %vm88_vm0, %v1335_v25 }
  0x12   :  { %330 = vmatpush.msra.mxu0 %v56_v28  ;;  %357 = vmatpush.msra.mxu1 %v57_v29 }
  0x13   :  { %384 = vmatpush.msra.mxu2 %v58_v34  ;;  %411 = vmatpush.msra.mxu3 %v59_v35 }
  0x14   :  { %331 = vmatpush.msra.mxu0 %v44_v30  ;;  %358 = vmatpush.msra.mxu1 %v45_v31 }
  0x15   :  { %385 = vmatpush.msra.mxu2 %v46_v36  ;;  %412 = vmatpush.msra.mxu3 %v47_v37  ;;  %v61_v37 = vld [vmem:[%s1828_s2 + $0x8] sm:$0xf] }
  0x16   :  { %332 = vmatpush.msra.mxu0 %v32_v32  ;;  %359 = vmatpush.msra.mxu1 %v33_v33 }
  0x17   :  { %386 = vmatpush.msra.mxu2 %v34_v38  ;;  %413 = vmatpush.msra.mxu3 %v35_v39 }
  0x18   :  { %1130 = vmatmul.msk.f32.gmra.mxu0 %vm88_vm0, %v1348_v26  ;;  %1134 = vmatmul.msk.f32.gmra.mxu1 %vm88_vm0, %v1348_v26 }
  0x19   :  { %1138 = vmatmul.msk.f32.gmra.mxu2 %vm88_vm0, %v1348_v26  ;;  %1142 = vmatmul.msk.f32.gmra.mxu3 %vm88_vm0, %v1348_v26 }
  0x20   :  { %1131 = vmatmul.msk.f32.gmra.mxu0 %vm88_vm0, %v1361_v27  ;;  %1135 = vmatmul.msk.f32.gmra.mxu1 %vm88_vm0, %v1361_v27 }
  0x21   :  { %1139 = vmatmul.msk.f32.gmra.mxu2 %vm88_vm0, %v1361_v27  ;;  %1143 = vmatmul.msk.f32.gmra.mxu3 %vm88_vm0, %v1361_v27 }
  0x28   :  { %1144 = vmatmul.msk.f32.vlgmr.msrb.gmra.mxu0 %vm88_vm0, %v1286_v12  ;;  %1148 = vmatmul.msk.f32.vlgmr.msrb.gmra.mxu1 %vm88_vm0, %v1286_v12 }
  0x29   :  { %1152 = vmatmul.msk.f32.vlgmr.msrb.gmra.mxu2 %vm88_vm0, %v1286_v12  ;;  %1156 = vmatmul.msk.f32.vlgmr.msrb.gmra.mxu3 %vm88_vm0, %v1286_v12 }
  0x30   :  { %1145 = vmatmul.msk.f32.gmra.mxu0 %vm88_vm0, %v1335_v25  ;;  %1149 = vmatmul.msk.f32.gmra.mxu1 %vm88_vm0, %v1335_v25 }
  0x31   :  { %1153 = vmatmul.msk.f32.gmra.mxu2 %vm88_vm0, %v1335_v25  ;;  %1157 = vmatmul.msk.f32.gmra.mxu3 %vm88_vm0, %v1335_v25 }
  0x38   :  { %1146 = vmatmul.msk.f32.gmra.mxu0 %vm88_vm0, %v1348_v26  ;;  %1150 = vmatmul.msk.f32.gmra.mxu1 %vm88_vm0, %v1348_v26 }
  0x39   :  { %1154 = vmatmul.msk.f32.gmra.mxu2 %vm88_vm0, %v1348_v26  ;;  %1158 = vmatmul.msk.f32.gmra.mxu3 %vm88_vm0, %v1348_v26 }
  0x40   :  { %1147 = vmatmul.msk.f32.gmra.mxu0 %vm88_vm0, %v1361_v27  ;;  %1151 = vmatmul.msk.f32.gmra.mxu1 %vm88_vm0, %v1361_v27 }
  0x41   :  { %1155 = vmatmul.msk.f32.gmra.mxu2 %vm88_vm0, %v1361_v27  ;;  %1159 = vmatmul.msk.f32.gmra.mxu3 %vm88_vm0, %v1361_v27 }
  0x48   :  { %1160 = vmatmul.msk.f32.vlgmr.msra.gmra.mxu0 %vm88_vm0, %v1286_v12  ;;  %1164 = vmatmul.msk.f32.vlgmr.msra.gmra.mxu1 %vm88_vm0, %v1286_v12 }
  0x49   :  { %1168 = vmatmul.msk.f32.vlgmr.msra.gmra.mxu2 %vm88_vm0, %v1286_v12  ;;  %1172 = vmatmul.msk.f32.vlgmr.msra.gmra.mxu3 %vm88_vm0, %v1286_v12  ;;  %v71_v12 = vperm.slane %v60_v62, 7 }
  0x50   :  { %1161 = vmatmul.msk.f32.gmra.mxu0 %vm88_vm0, %v1335_v25  ;;  %1165 = vmatmul.msk.f32.gmra.mxu1 %vm88_vm0, %v1335_v25 }
  0x51   :  { %1169 = vmatmul.msk.f32.gmra.mxu2 %vm88_vm0, %v1335_v25  ;;  %1173 = vmatmul.msk.f32.gmra.mxu3 %vm88_vm0, %v1335_v25 }
  0x58   :  { %1162 = vmatmul.msk.f32.gmra.mxu0 %vm88_vm0, %v1348_v26  ;;  %1166 = vmatmul.msk.f32.gmra.mxu1 %vm88_vm0, %v1348_v26 }
  0x59   :  { %1170 = vmatmul.msk.f32.gmra.mxu2 %vm88_vm0, %v1348_v26  ;;  %1174 = vmatmul.msk.f32.gmra.mxu3 %vm88_vm0, %v1348_v26 }
  0x60   :  { %1163 = vmatmul.msk.f32.gmra.mxu0 %vm88_vm0, %v1361_v27  ;;  %1167 = vmatmul.msk.f32.gmra.mxu1 %vm88_vm0, %v1361_v27 }
  0x61   :  { %1171 = vmatmul.msk.f32.gmra.mxu2 %vm88_vm0, %v1361_v27  ;;  %1175 = vmatmul.msk.f32.gmra.mxu3 %vm88_vm0, %v1361_v27 }
  0x85   :  { %v118_v40 = vpop.f32.mrf.mxu0  ;;  %v145_v41 = vpop.f32.mrf.mxu1 }
  0x86   :  { %v119_v9 = vadd.f32 %v118_v40, %v64_v3  ;;  %v146_v10 = vadd.f32 %v145_v41, %v65_v4  ;;  %v72_v40 = vperm.slane %v61_v37, 0  ;;  %v73_v41 = vperm.slane %v61_v37, 1 }
  0x8c   :  { %v172_v42 = vpop.f32.mrf.mxu2  ;;  %v199_v43 = vpop.f32.mrf.mxu3 }
  0x8d   :  { %v121_v44 = vpop.f32.mrf.mxu0  ;;  %v148_v45 = vpop.f32.mrf.mxu1  ;;  %v173_v23 = vadd.f32 %v172_v42, %v66_v13  ;;  %v200_v24 = vadd.f32 %v199_v43, %v67_v14 }
  0x8e   :  { %v122_v25 = vadd.f32 %v121_v44, %v64_v3  ;;  %v149_v26 = vadd.f32 %v148_v45, %v65_v4 }
  0x94   :  { %v1467_v46 = vpop.f32.mrf.mxu2  ;;  %v1469_v47 = vpop.f32.mrf.mxu3 }
  0x95   :  { %v124_v48 = vpop.f32.mrf.mxu0  ;;  %v151_v49 = vpop.f32.mrf.mxu1  ;;  %v176_v31 = vadd.f32 %v1467_v46, %v66_v13  ;;  %v203_v32 = vadd.f32 %v1469_v47, %v67_v14 }
  0x9c   :  { %v178_v50 = vpop.f32.mrf.mxu2  ;;  %v205_v51 = vpop.f32.mrf.mxu3 }
  0x9d   :  { %v126_v52 = vpop.f32.mrf.mxu0  ;;  %v153_v53 = vpop.f32.mrf.mxu1 }
  0x9e   :  { %v74_v52 = vperm.slane %v61_v37, 2  ;;  %v75_v53 = vperm.slane %v61_v37, 3 }
  0xa4   :  { %v180_v54 = vpop.f32.mrf.mxu2  ;;  %v207_v55 = vpop.f32.mrf.mxu3 }
  0xa5   :  { %v226_v56 = vpop.f32.mrf.mxu0  ;;  %v253_v57 = vpop.f32.mrf.mxu1 }
  0xac   :  { %v280_v58 = vpop.f32.mrf.mxu2  ;;  %v307_v59 = vpop.f32.mrf.mxu3 }
  0xad   :  { %v228_v60 = vpop.f32.mrf.mxu0  ;;  %v255_v61 = vpop.f32.mrf.mxu1 }
  0xb4   :  { %v282_v1 = vpop.f32.mrf.mxu2  ;;  %v309_v2 = vpop.f32.mrf.mxu3 }
  0xb5   :  { %v230_v5 = vpop.f32.mrf.mxu0  ;;  %v257_v6 = vpop.f32.mrf.mxu1 }
  0xb6   :  { %v231_v7 = vadd.f32 %v230_v5, %v68_v63  ;;  %v258_v8 = vadd.f32 %v257_v6, %v69_v0 }
  0xb8   :  { %440 = vmatpush.xpose.msrb.mxu0 %v231_v7  ;;  %460 = vmatpush.xpose.msrb.mxu1 %v258_v8 }
  0xbb   :  { %441 = vmatmul.f32.vlgmr.msrb.gmra.mxu0 %v119_v9  ;;  %461 = vmatmul.f32.vlgmr.msrb.gmra.mxu1 %v146_v10 }
  0xbc   :  { %v284_v15 = vpop.f32.mrf.mxu2  ;;  %v311_v16 = vpop.f32.mrf.mxu3 }
  0xbd   :  { %v285_v17 = vadd.f32 %v284_v15, %v70_v11  ;;  %v312_v18 = vadd.f32 %v311_v16, %v71_v12  ;;  %v233_v19 = vpop.f32.mrf.mxu0  ;;  %v260_v20 = vpop.f32.mrf.mxu1 }
  0xbe   :  { %v234_v21 = vadd.f32 %v233_v19, %v68_v63  ;;  %v261_v22 = vadd.f32 %v260_v20, %v69_v0 }
  0xbf   :  { %480 = vmatpush.xpose.msrb.mxu2 %v285_v17  ;;  %500 = vmatpush.xpose.msrb.mxu3 %v312_v18 }
  0xc0   :  { %520 = vmatpush.xpose.msra.mxu0 %v234_v21  ;;  %540 = vmatpush.xpose.msra.mxu1 %v261_v22 }
  0xc2   :  { %481 = vmatmul.f32.vlgmr.msrb.gmra.mxu2 %v173_v23  ;;  %501 = vmatmul.f32.vlgmr.msrb.gmra.mxu3 %v200_v24 }
  0xc3   :  { %521 = vmatmul.f32.vlgmr.msra.gmra.mxu0 %v122_v25  ;;  %541 = vmatmul.f32.vlgmr.msra.gmra.mxu1 %v149_v26 }
  0xc4   :  { %v287_v27 = vpop.f32.mrf.mxu2  ;;  %v314_v28 = vpop.f32.mrf.mxu3 }
  0xc5   :  { %v288_v29 = vadd.f32 %v287_v27, %v70_v11  ;;  %v315_v30 = vadd.f32 %v314_v28, %v71_v12  ;;  %v334_v33 = vpop.f32.mrf.mxu0  ;;  %v361_v34 = vpop.f32.mrf.mxu1 }
  0xc7   :  { %560 = vmatpush.xpose.msra.mxu2 %v288_v29  ;;  %580 = vmatpush.xpose.msra.mxu3 %v315_v30 }
  0xca   :  { %561 = vmatmul.f32.vlgmr.msra.gmra.mxu2 %v176_v31  ;;  %581 = vmatmul.f32.vlgmr.msra.gmra.mxu3 %v203_v32 }
  0xcc   :  { %v388_v38 = vpop.f32.mrf.mxu2  ;;  %v415_v39 = vpop.f32.mrf.mxu3 }
  0xcd   :  { %v336_v35 = vpop.f32.mrf.mxu0  ;;  %v363_v36 = vpop.f32.mrf.mxu1 }
  0xd4   :  { %v390_v46 = vpop.f32.mrf.mxu2  ;;  %v417_v47 = vpop.f32.mrf.mxu3 }
  0xd5   :  { %v338_v42 = vpop.f32.mrf.mxu0  ;;  %v365_v43 = vpop.f32.mrf.mxu1 }
  0xd6   :  { %v339_v44 = vadd.f32 %v338_v42, %v72_v40  ;;  %v366_v45 = vadd.f32 %v365_v43, %v73_v41 }
  0xd8   :  { %796 = vmatpush.msrb.mxu0 %v339_v44  ;;  %819 = vmatpush.msrb.mxu1 %v366_v45 }
  0xdc   :  { %v392_v54 = vpop.f32.mrf.mxu2  ;;  %v419_v55 = vpop.f32.mrf.mxu3 }
  0xdd   :  { %v341_v48 = vpop.f32.mrf.mxu0  ;;  %v368_v49 = vpop.f32.mrf.mxu1  ;;  %v393_v56 = vadd.f32 %v392_v54, %v74_v52  ;;  %v420_v57 = vadd.f32 %v419_v55, %v75_v53 }
  0xde   :  { %v342_v50 = vadd.f32 %v341_v48, %v72_v40  ;;  %v369_v51 = vadd.f32 %v368_v49, %v73_v41 }
  0xdf   :  { %842 = vmatpush.msrb.mxu2 %v393_v56  ;;  %865 = vmatpush.msrb.mxu3 %v420_v57 }
  0xe0   :  { %888 = vmatpush.msra.mxu0 %v342_v50  ;;  %911 = vmatpush.msra.mxu1 %v369_v51 }
  0xe4   :  { %v395_v58 = vpop.f32.mrf.mxu2  ;;  %v422_v59 = vpop.f32.mrf.mxu3 }
  0xe5   :  { %v396_v60 = vadd.f32 %v395_v58, %v74_v52  ;;  %v423_v61 = vadd.f32 %v422_v59, %v75_v53 }
  0xe7   :  { %934 = vmatpush.msra.mxu2 %v396_v60  ;;  %957 = vmatpush.msra.mxu3 %v423_v61 }
 0x138   :  { %v442_v62 = vpop.f32.mrf.mxu0  ;;  %v462_v63 = vpop.f32.mrf.mxu1 }
 0x139   :  { %v589_v0 = vsel %vm585_vm1, %v462_v63, -inf  ;;  %v586_v1 = vsel %vm585_vm1, %v442_v62, -inf }
 0x13a   :  { %590 = vmax.xlane.f32.xlu2 %v589_v0  ;;  %587 = vmax.xlane.f32.xlu1 %v586_v1 }
 0x140   :  { %v522_v10 = vpop.f32.mrf.mxu0  ;;  %v542_v11 = vpop.f32.mrf.mxu1 }
 0x141   :  { %v598_v12 = vsel %vm585_vm1, %v522_v10, -inf  ;;  %v601_v13 = vsel %vm585_vm1, %v542_v11, -inf }
 0x145   :  { %v482_v2 = vpop.f32.mrf.mxu2  ;;  %v502_v3 = vpop.f32.mrf.mxu3 }
 0x146   :  { %v592_v4 = vsel %vm585_vm1, %v482_v2, -inf  ;;  %v595_v7 = vsel %vm585_vm1, %v502_v3, -inf }
 0x147   :  { %593 = vmax.xlane.f32.xlu0 %v592_v4 }
 0x14d   :  { %v562_v5 = vpop.f32.mrf.mxu2  ;;  %v582_v6 = vpop.f32.mrf.mxu3 }
 0x14e   :  { %v607_v8 = vsel %vm585_vm1, %v582_v6, -inf  ;;  %v604_v9 = vsel %vm585_vm1, %v562_v5, -inf }
 0x14f   :  { %596 = vmax.xlane.f32.xlu0 %v595_v7  ;;  %608 = vmax.xlane.f32.xlu2 %v607_v8 }
 0x150   :  { %605 = vmax.xlane.f32.xlu1 %v604_v9 }
 0x157   :  { %599 = vmax.xlane.f32.xlu0 %v598_v12  ;;  %v977_v12 = vld [vmem:[%s1829_s3 + $0x78] sm:$0xff] }
 0x158   :  { %602 = vmax.xlane.f32.xlu1 %v601_v13  ;;  %v976_v13 = vld [vmem:[%s1829_s3 + $0x70] sm:$0xff] }
 0x1ad   :  { %v588_v14 = vpop.xlane.xlu1 %587  ;;  %v591_v18 = vpop.xlane.xlu2 %590 }
 0x1ae   :  { %v610_v15 = vsub.f32 %v442_v62, %v588_v14  ;;  %v611_v30 = vsub.f32 %v462_v63, %v591_v18 }
 0x1b0   :  { %v618_v16 = vmul.f32 1.442695, %v610_v15  ;;  %v620_v35 = vmul.f32 1.442695, %v611_v30 }
 0x1b2   :  { %1185 = vpow2.f32 %v618_v16  ;;  %v975_v16 = vld [vmem:[%s1829_s3 + $0x68] sm:$0xff] }
 0x1b8   :  { %v1491_v17 = vpop.eup %1185 }
 0x1b9   :  { %v634_v20 = vsel %vm585_vm1, %v1491_v17, 0.0 }
 0x1ba   :  { %v594_v19 = vpop.xlane.xlu0 %593  ;;  %635 = vadd.xlane.f32.xlu1 %v634_v20 }
 0x1bb   :  { %v612_v21 = vsub.f32 %v482_v2, %v594_v19 }
 0x1bd   :  { %v622_v22 = vmul.f32 1.442695, %v612_v21 }
 0x1bf   :  { %1187 = vpow2.f32 %v622_v22 }
 0x1c2   :  { %v597_v23 = vpop.xlane.xlu0 %596  ;;  %v609_v24 = vpop.xlane.xlu2 %608 }
 0x1c3   :  { %v613_v25 = vsub.f32 %v502_v3, %v597_v23  ;;  %v617_v26 = vsub.f32 %v582_v6, %v609_v24  ;;  %v606_v27 = vpop.xlane.xlu1 %605  ;;  %v974_v24 = vld [vmem:[%s1829_s3 + $0x60] sm:$0xff] }
 0x1c4   :  { %v616_v28 = vsub.f32 %v562_v5, %v606_v27 }
 0x1c5   :  { %v1495_v29 = vpop.eup %1187  ;;  %v624_v31 = vmul.f32 1.442695, %v613_v25  ;;  %v632_v32 = vmul.f32 1.442695, %v617_v26 }
 0x1c6   :  { %v630_v33 = vmul.f32 1.442695, %v616_v28  ;;  %v640_v34 = vsel %vm585_vm1, %v1495_v29, 0.0 }
 0x1c7   :  { %1189 = vpow2.f32 %v624_v31  ;;  %641 = vadd.xlane.f32.xlu2 %v640_v34 }
 0x1c8   :  { %1191 = vpow2.f32 %v632_v32 }
 0x1c9   :  { %1193 = vpow2.f32 %v630_v33  ;;  %v973_v33 = vld [vmem:[%s1829_s3 + $0x58] sm:$0xff] }
 0x1ca   :  { %v600_v36 = vpop.xlane.xlu0 %599  ;;  %1195 = vpow2.f32 %v620_v35 }
 0x1cb   :  { %v603_v37 = vpop.xlane.xlu1 %602  ;;  %v614_v38 = vsub.f32 %v522_v10, %v600_v36 }
 0x1cc   :  { %v615_v40 = vsub.f32 %v542_v11, %v603_v37 }
 0x1cd   :  { %v1499_v39 = vpop.eup %1189  ;;  %v626_v41 = vmul.f32 1.442695, %v614_v38 }
 0x1ce   :  { %v1501_v42 = vpop.eup %1191  ;;  %v643_v43 = vsel %vm585_vm1, %v1499_v39, 0.0  ;;  %v628_v47 = vmul.f32 1.442695, %v615_v40  ;;  %v972_v40 = vld [vmem:[%s1829_s3 + $0x50] sm:$0xff] }
 0x1cf   :  { %v1505_v44 = vpop.eup %1193  ;;  %1197 = vpow2.f32 %v626_v41  ;;  %v655_v45 = vsel %vm585_vm1, %v1501_v42, 0.0  ;;  %644 = vadd.xlane.f32.xlu0 %v643_v43  ;;  %v1009_v41 = vld [vmem:[%s1829_s3 + $0x178] sm:$0xff] }
 0x1d0   :  { %656 = vadd.xlane.f32.xlu1 %v655_v45  ;;  %v652_v46 = vsel %vm585_vm1, %v1505_v44, 0.0  ;;  %v1511_v48 = vpop.eup %1195  ;;  %1199 = vpow2.f32 %v628_v47 }
 0x1d1   :  { %653 = vadd.xlane.f32.xlu2 %v652_v46  ;;  %v637_v50 = vsel %vm585_vm1, %v1511_v48, 0.0 }
 0x1d5   :  { %v1513_v49 = vpop.eup %1197 }
 0x1d6   :  { %v646_v51 = vsel %vm585_vm1, %v1513_v49, 0.0  ;;  %v1519_v52 = vpop.eup %1199 }
 0x1d7   :  { %638 = vadd.xlane.f32.xlu0 %v637_v50  ;;  %v649_v53 = vsel %vm585_vm1, %v1519_v52, 0.0 }
 0x1d9   :  { %647 = vadd.xlane.f32.xlu2 %v646_v51 }
 0x1df   :  { %650 = vadd.xlane.f32.xlu0 %v649_v53  ;;  %v971_v53 = vld [vmem:[%s1829_s3 + $0x48] sm:$0xff] }
 0x22d   :  { %v636_v54 = vpop.xlane.xlu1 %635 }
 0x22e   :  { %1201 = vrcp.f32 %v636_v54  ;;  %v669_v58 = vand.u32 2147483648, %v636_v54  ;;  %v667_v60 = vand.u32 2147483647, %v636_v54  ;;  %vm663_vm3 = vweird.f32 %v636_v54 }
 0x230   :  { %v670_v63 = vor.u32 1.1754944e-38, %v669_v58  ;;  %vm668_vm5 = vcmp.eq.f32.partialorder %v667_v60, 8.507059e+37 }
 0x234   :  { %v1202_v55 = vpop.eup %1201 }
 0x235   :  { %v659_v56 = vmul.f32 %v1202_v55, %v636_v54  ;;  %vm664_vm2 = vweird.f32 %v1202_v55  ;;  %v1008_v54 = vld [vmem:[%s1829_s3 + $0x170] sm:$0xff] }
 0x236   :  { %vm665_vm4 = vmor %vm663_vm3, %vm664_vm2 }
 0x237   :  { %v660_v57 = vsub.f32 1.0, %v659_v56 }
 0x239   :  { %v661_v59 = vmul.f32 %v1202_v55, %v660_v57 }
 0x23a   :  { %v642_v61 = vpop.xlane.xlu2 %641 }
 0x23b   :  { %1203 = vrcp.f32 %v642_v61  ;;  %v662_v62 = vadd.f32 %v1202_v55, %v661_v59  ;;  %v697_v10 = vand.u32 2147483648, %v642_v61  ;;  %v695_v11 = vand.u32 2147483647, %v642_v61 }
 0x23c   :  { %vm691_vm7 = vweird.f32 %v642_v61 }
 0x23d   :  { %v666_v0 = vsel %vm665_vm4, %v1202_v55, %v662_v62  ;;  %v698_v19 = vor.u32 1.1754944e-38, %v697_v10  ;;  %vm696_vm9 = vcmp.eq.f32.partialorder %v695_v11, 8.507059e+37  ;;  %v1018_v10 = vld [vmem:[%s1829_s3 + $0x1c0] sm:$0xff] }
 0x23e   :  { %v671_v1 = vsel %vm668_vm5, %v670_v63, %v666_v0  ;;  %v970_v63 = vld [vmem:[%s1829_s3 + $0x40] sm:$0xff]  ;;  %v1007_v0 = vld [vmem:[%s1829_s3 + $0x168] sm:$0xff] }
 0x23f   :  { %v770_v2 = vmul.f32 %v1491_v17, %v671_v1 }
 0x241   :  { %v1204_v3 = vpop.eup %1203  ;;  %1176 = vmatmul.msk.f32.vlgmr.msrb.gmra.mxu0 %vm585_vm1, %v770_v2 }
 0x242   :  { %v687_v4 = vmul.f32 %v1204_v3, %v642_v61  ;;  %v645_v5 = vpop.xlane.xlu0 %644  ;;  %vm692_vm6 = vweird.f32 %v1204_v3  ;;  %1030 = vmatpush.msrb.mxu0 %v977_v12 }
 0x243   :  { %v1525_v6 = vpop.xlane.xlu1 %656  ;;  %1205 = vrcp.f32 %v645_v5  ;;  %vm693_vm8 = vmor %vm691_vm7, %vm692_vm6  ;;  %v709_v31 = vand.u32 2147483647, %v645_v5  ;;  %v711_v32 = vand.u32 2147483648, %v645_v5  ;;  %vm705_vm11 = vweird.f32 %v645_v5 }
 0x244   :  { %v688_v7 = vsub.f32 1.0, %v687_v4  ;;  %v1527_v8 = vpop.xlane.xlu2 %653  ;;  %1207 = vrcp.f32 %v1525_v6  ;;  %1031 = vmatpush.msrb.mxu0 %v976_v13  ;;  %vm761_vm14 = vweird.f32 %v1525_v6  ;;  %v767_v2 = vand.u32 2147483648, %v1525_v6 }
 0x245   :  { %1209 = vrcp.f32 %v1527_v8  ;;  %v753_v35 = vand.u32 2147483648, %v1527_v8  ;;  %v751_v45 = vand.u32 2147483647, %v1527_v8  ;;  %vm747_vm13 = vweird.f32 %v1527_v8 }
 0x246   :  { %v689_v9 = vmul.f32 %v1204_v3, %v688_v7  ;;  %1032 = vmatpush.msrb.mxu0 %v975_v16  ;;  %vm1576_vm0 = vcmp.eq.f32.partialorder %v709_v31, 8.507059e+37  ;;  %v712_v51 = vor.u32 1.1754944e-38, %v711_v32 }
 0x247   :  { %v754_v56 = vor.u32 1.1754944e-38, %v753_v35  ;;  %vm752_vm4 = vcmp.eq.f32.partialorder %v751_v45, 8.507059e+37 }
 0x248   :  { %v690_v14 = vadd.f32 %v1204_v3, %v689_v9  ;;  %1033 = vmatpush.msrb.mxu0 %v974_v24  ;;  %v969_v9 = vld [vmem:[%s1829_s3 + $0x38] sm:$0xff] }
 0x249   :  { %v1206_v15 = vpop.eup %1205 }
 0x24a   :  { %v1540_v17 = vpop.eup %1207  ;;  %v694_v18 = vsel %vm693_vm8, %v1204_v3, %v690_v14  ;;  %v701_v20 = vmul.f32 %v1206_v15, %v645_v5  ;;  %v1542_v21 = vpop.xlane.xlu0 %638  ;;  %vm706_vm10 = vweird.f32 %v1206_v15  ;;  %1034 = vmatpush.msrb.mxu0 %v973_v33  ;;  %v765_v5 = vand.u32 2147483647, %v1525_v6  ;;  %v966_v33 = vld [vmem:[%s1829_s3 + $0x20] sm:$0xff] }
 0x24b   :  { %v1210_v22 = vpop.eup %1209  ;;  %v757_v23 = vmul.f32 %v1540_v17, %v1525_v6  ;;  %1211 = vrcp.f32 %v1542_v21  ;;  %v699_v25 = vsel %vm696_vm9, %v698_v19, %v694_v18  ;;  %vm1572_vm15 = vmor %vm705_vm11, %vm706_vm10  ;;  %vm762_vm3 = vweird.f32 %v1540_v17 }
 0x24c   :  { %v743_v26 = vmul.f32 %v1210_v22, %v1527_v8  ;;  %v702_v27 = vsub.f32 1.0, %v701_v20  ;;  %v1551_v28 = vpop.xlane.xlu2 %647  ;;  %v772_v38 = vmul.f32 %v1495_v29, %v699_v25  ;;  %vm748_vm12 = vweird.f32 %v1210_v22  ;;  %1035 = vmatpush.msrb.mxu0 %v972_v40  ;;  %vm1621_vm5 = vmor %vm761_vm14, %vm762_vm3  ;;  %v967_v25 = vld [vmem:[%s1829_s3 + $0x28] sm:$0xff]  ;;  %v965_v29 = vld [vmem:[%s1829_s3 + $0x18] sm:$0xff] }
 0x24d   :  { %v758_v30 = vsub.f32 1.0, %v757_v23  ;;  %1213 = vrcp.f32 %v1551_v28  ;;  %vm749_vm2 = vmor %vm747_vm13, %vm748_vm12  ;;  %v725_v7 = vand.u32 2147483648, %v1551_v28  ;;  %v683_v12 = vand.u32 2147483648, %v1542_v21 }
 0x24e   :  { %v744_v34 = vsub.f32 1.0, %v743_v26  ;;  %v703_v36 = vmul.f32 %v1206_v15, %v702_v27  ;;  %1178 = vmatmul.msk.f32.vlgmr.msrb.gmra.mxu2 %vm585_vm1, %v772_v38  ;;  %1036 = vmatpush.msrb.mxu0 %v971_v53  ;;  %v681_v18 = vand.u32 2147483647, %v1542_v21  ;;  %v768_v19 = vor.u32 1.1754944e-38, %v767_v2  ;;  %v1005_v26 = vld [vmem:[%s1829_s3 + $0x158] sm:$0xff]  ;;  %v963_v53 = vld [vmem:[%s1829_s3 + $0x8] sm:$0xff] }
 0x24f   :  { %v759_v37 = vmul.f32 %v1540_v17, %v758_v30  ;;  %1076 = vmatpush.msrb.mxu2 %v1009_v41  ;;  %vm766_vm8 = vcmp.eq.f32.partialorder %v765_v5, 8.507059e+37  ;;  %vm719_vm9 = vweird.f32 %v1551_v28  ;;  %vm677_vm10 = vweird.f32 %v1542_v21  ;;  %v1000_v2 = vld [vmem:[%s1829_s3 + $0x130] sm:$0xff]  ;;  %v999_v5 = vld [vmem:[%s1829_s3 + $0x128] sm:$0xff] }
 0x250   :  { %v745_v43 = vmul.f32 %v1210_v22, %v744_v34  ;;  %v704_v46 = vadd.f32 %v1206_v15, %v703_v36  ;;  %1037 = vmatpush.msrb.mxu0 %v970_v63  ;;  %v726_v31 = vor.u32 1.1754944e-38, %v725_v7  ;;  %vm682_vm13 = vcmp.eq.f32.partialorder %v681_v18, 8.507059e+37  ;;  %v1004_v34 = vld [vmem:[%s1829_s3 + $0x150] sm:$0xff]  ;;  %v1001_v63 = vld [vmem:[%s1829_s3 + $0x138] sm:$0xff]  ;;  %v1019_v7 = vld [vmem:[%s1829_s3 + $0x1c8] sm:$0xff] }
 0x251   :  { %v1567_v47 = vpop.eup %1211  ;;  %v760_v61 = vadd.f32 %v1540_v17, %v759_v37  ;;  %1077 = vmatpush.msrb.mxu2 %v1008_v54  ;;  %v995_v18 = vld [vmem:[%s1829_s3 + $0x108] sm:$0xff] }
 0x252   :  { %v746_v55 = vadd.f32 %v1210_v22, %v745_v43  ;;  %v708_v57 = vsel %vm1572_vm15, %v1206_v15, %v704_v46  ;;  %v673_v58 = vmul.f32 %v1567_v47, %v1542_v21  ;;  %v1591_v59 = vpop.xlane.xlu0 %650  ;;  %v1025_v15 = vld [vmem:[%s1829_s3 + $0x1f8] sm:$0xff]  ;;  %vm678_vm6 = vweird.f32 %v1567_v47  ;;  %1038 = vmatpush.msrb.mxu0 %v969_v9  ;;  %v998_v9 = vld [vmem:[%s1829_s3 + $0x120] sm:$0xff] }
 0x253   :  { %v1593_v60 = vpop.eup %1213  ;;  %v713_v62 = vsel %vm1576_vm0, %v712_v51, %v708_v57  ;;  %1215 = vrcp.f32 %v1591_v59  ;;  %1078 = vmatpush.msrb.mxu2 %v1007_v0  ;;  %v764_v6 = vsel %vm1621_vm5, %v1540_v17, %v760_v61  ;;  %v723_v17 = vand.u32 2147483647, %v1551_v28  ;;  %vm679_vm11 = vmor %vm677_vm10, %vm678_vm6  ;;  %v992_v57 = vld [vmem:[%s1829_s3 + $0xf0] sm:$0xff]  ;;  %v1022_v61 = vld [vmem:[%s1829_s3 + $0x1e0] sm:$0xff] }
 0x254   :  { %v750_v1 = vsel %vm749_vm2, %v1210_v22, %v746_v55  ;;  %v715_v3 = vmul.f32 %v1593_v60, %v1551_v28  ;;  %v674_v8 = vsub.f32 1.0, %v673_v58  ;;  %v773_v13 = vmul.f32 %v1499_v39, %v713_v62  ;;  %v968_v39 = vld [vmem:[%s1829_s3 + $0x30] sm:$0xff]  ;;  %v1003_v58 = vld [vmem:[%s1829_s3 + $0x148] sm:$0xff]  ;;  %v990_v62 = vld [vmem:[%s1829_s3 + $0xe0] sm:$0xff] }
 0x255   :  { %v755_v4 = vsel %vm752_vm4, %v754_v56, %v750_v1  ;;  %vm720_vm7 = vweird.f32 %v1593_v60  ;;  %v1024_v22 = vld [vmem:[%s1829_s3 + $0x1f0] sm:$0xff]  ;;  %v769_v27 = vsel %vm766_vm8, %v768_v19, %v764_v6  ;;  %v684_v28 = vor.u32 1.1754944e-38, %v683_v12  ;;  %1039 = vmatpush.msrb.mxu0 %v968_v39  ;;  %v962_v56 = vld [vmem:[%s1829_s3] sm:$0xff]  ;;  %v1021_v0 = vld [vmem:[%s1829_s3 + $0x1d8] sm:$0xff] }
 0x256   :  { %v716_v11 = vsub.f32 1.0, %v715_v3  ;;  %v776_v14 = vmul.f32 %v1505_v44, %v755_v4  ;;  %v675_v16 = vmul.f32 %v1567_v47, %v674_v8  ;;  %v1006_v44 = vld [vmem:[%s1829_s3 + $0x160] sm:$0xff]  ;;  %1179 = vmatmul.msk.f32.vlgmr.msrb.gmra.mxu3 %vm585_vm1, %v773_v13  ;;  %vm721_vm12 = vmor %vm719_vm9, %vm720_vm7  ;;  %vm724_vm14 = vcmp.eq.f32.partialorder %v723_v17, 8.507059e+37  ;;  %v989_v1 = vld [vmem:[%s1829_s3 + $0xd8] sm:$0xff] }
 0x257   :  { %1099 = vmatpush.msrb.mxu3 %v1025_v15  ;;  %1079 = vmatpush.msrb.mxu2 %v1006_v44  ;;  %v777_v38 = vmul.f32 %v1501_v42, %v769_v27  ;;  %v739_v41 = vand.u32 2147483648, %v1591_v59  ;;  %v993_v42 = vld [vmem:[%s1829_s3 + $0xf8] sm:$0xff]  ;;  %vm733_vm0 = vweird.f32 %v1591_v59  ;;  %v1020_v3 = vld [vmem:[%s1829_s3 + $0x1d0] sm:$0xff]  ;;  %v987_v8 = vld [vmem:[%s1829_s3 + $0xc8] sm:$0xff] }
 0x258   :  { %v717_v20 = vmul.f32 %v1593_v60, %v716_v11  ;;  %v676_v24 = vadd.f32 %v1567_v47, %v675_v16  ;;  %1182 = vmatmul.msk.f32.vlgmr.msra.gmra.mxu2 %vm585_vm1, %v776_v14  ;;  %1040 = vmatpush.msrb.mxu0 %v967_v25  ;;  %v988_v4 = vld [vmem:[%s1829_s3 + $0xd0] sm:$0xff]  ;;  %v986_v11 = vld [vmem:[%s1829_s3 + $0xc0] sm:$0xff]  ;;  %v997_v12 = vld [vmem:[%s1829_s3 + $0x118] sm:$0xff] }
 0x259   :  { %v1216_v23 = vpop.eup %1215  ;;  %1100 = vmatpush.msrb.mxu3 %v1024_v22  ;;  %1080 = vmatpush.msrb.mxu2 %v1005_v26  ;;  %v1017_v13 = vld [vmem:[%s1829_s3 + $0x1b8] sm:$0xff]  ;;  %v996_v15 = vld [vmem:[%s1829_s3 + $0x110] sm:$0xff]  ;;  %v1015_v39 = vld [vmem:[%s1829_s3 + $0x1a8] sm:$0xff] }
 0x25a   :  { %v718_v30 = vadd.f32 %v1593_v60, %v717_v20  ;;  %v729_v21 = vmul.f32 %v1216_v23, %v1591_v59  ;;  %v680_v32 = vsel %vm679_vm11, %v1567_v47, %v676_v24  ;;  %vm734_vm15 = vweird.f32 %v1216_v23  ;;  %1041 = vmatpush.msrb.mxu0 %v966_v33  ;;  %v985_v14 = vld [vmem:[%s1829_s3 + $0xb8] sm:$0xff]  ;;  %v1016_v6 = vld [vmem:[%s1829_s3 + $0x1b0] sm:$0xff]  ;;  %v983_v44 = vld [vmem:[%s1829_s3 + $0xa8] sm:$0xff] }
 0x25b   :  { %v685_v36 = vsel %vm682_vm13, %v684_v28, %v680_v32  ;;  %v737_v47 = vand.u32 2147483647, %v1591_v59  ;;  %1081 = vmatpush.msrb.mxu2 %v1004_v34  ;;  %vm735_vm2 = vmor %vm733_vm0, %vm734_vm15  ;;  %v991_v59 = vld [vmem:[%s1829_s3 + $0xe8] sm:$0xff]  ;;  %v984_v16 = vld [vmem:[%s1829_s3 + $0xb0] sm:$0xff] }
 0x25c   :  { %v722_v35 = vsel %vm721_vm12, %v1593_v60, %v718_v30  ;;  %v730_v37 = vsub.f32 1.0, %v729_v21  ;;  %v771_v43 = vmul.f32 %v1511_v48, %v685_v36  ;;  %v964_v48 = vld [vmem:[%s1829_s3 + $0x10] sm:$0xff]  ;;  %1042 = vmatpush.msrb.mxu0 %v965_v29  ;;  %v1002_v60 = vld [vmem:[%s1829_s3 + $0x140] sm:$0xff]  ;;  %v1013_v22 = vld [vmem:[%s1829_s3 + $0x198] sm:$0xff] }
 0x25d   :  { %v727_v40 = vsel %vm724_vm14, %v726_v31, %v722_v35  ;;  %vm738_vm3 = vcmp.eq.f32.partialorder %v737_v47, 8.507059e+37  ;;  %1082 = vmatpush.msrb.mxu2 %v1003_v58  ;;  %v994_v19 = vld [vmem:[%s1829_s3 + $0x100] sm:$0xff]  ;;  %v1012_v24 = vld [vmem:[%s1829_s3 + $0x190] sm:$0xff]  ;;  %v1011_v26 = vld [vmem:[%s1829_s3 + $0x188] sm:$0xff] }
 0x25e   :  { %v774_v45 = vmul.f32 %v1513_v49, %v727_v40  ;;  %v731_v46 = vmul.f32 %v1216_v23, %v730_v37  ;;  %1177 = vmatmul.msk.f32.vlgmr.msrb.gmra.mxu1 %vm585_vm1, %v771_v43  ;;  %1183 = vmatmul.msk.f32.vlgmr.msra.gmra.mxu3 %vm585_vm1, %v777_v38  ;;  %v740_v49 = vor.u32 1.1754944e-38, %v739_v41  ;;  %v1014_v20 = vld [vmem:[%s1829_s3 + $0x1a0] sm:$0xff]  ;;  %v980_v25 = vld [vmem:[%s1829_s3 + $0x90] sm:$0xff]  ;;  %v979_v27 = vld [vmem:[%s1829_s3 + $0x88] sm:$0xff] }
 0x25f   :  { %1053 = vmatpush.msrb.mxu1 %v993_v42  ;;  %1043 = vmatpush.msrb.mxu0 %v964_v48  ;;  %v982_v17 = vld [vmem:[%s1829_s3 + $0xa0] sm:$0xff] }
 0x260   :  { %v732_v50 = vadd.f32 %v1216_v23, %v731_v46  ;;  %1180 = vmatmul.msk.f32.vlgmr.msra.gmra.mxu0 %vm585_vm1, %v774_v45  ;;  %1083 = vmatpush.msrb.mxu2 %v1002_v60  ;;  %v1010_v30 = vld [vmem:[%s1829_s3 + $0x180] sm:$0xff] }
 0x261   :  { %1044 = vmatpush.msrb.mxu0 %v963_v53  ;;  %1054 = vmatpush.msrb.mxu1 %v992_v57  ;;  %v978_v28 = vld [vmem:[%s1829_s3 + $0x80] sm:$0xff] }
 0x262   :  { %v736_v51 = vsel %vm735_vm2, %v1216_v23, %v732_v50  ;;  %1084 = vmatpush.msrb.mxu2 %v1001_v63  ;;  %v981_v23 = vld [vmem:[%s1829_s3 + $0x98] sm:$0xff]  ;;  %v1184_v38 = vld [vmem:[%s1830_s4] ss:$0 sm:$0xff] }
 0x263   :  { %v741_v54 = vsel %vm738_vm3, %v740_v49, %v736_v51  ;;  %1045 = vmatpush.msrb.mxu0 %v962_v56  ;;  %1055 = vmatpush.msrb.mxu1 %v991_v59 }
 0x264   :  { %v775_v55 = vmul.f32 %v1519_v52, %v741_v54  ;;  %v1023_v52 = vld [vmem:[%s1829_s3 + $0x1e8] sm:$0xff]  ;;  %1085 = vmatpush.msrb.mxu2 %v1000_v2 }
 0x265   :  { %1101 = vmatpush.msrb.mxu3 %v1023_v52  ;;  %1056 = vmatpush.msrb.mxu1 %v990_v62 }
 0x266   :  { %1181 = vmatmul.msk.f32.vlgmr.msra.gmra.mxu1 %vm585_vm1, %v775_v55  ;;  %1086 = vmatpush.msrb.mxu2 %v999_v5 }
 0x267   :  { %1102 = vmatpush.msrb.mxu3 %v1022_v61  ;;  %1057 = vmatpush.msrb.mxu1 %v989_v1 }
 0x268   :  { %1087 = vmatpush.msrb.mxu2 %v998_v9 }
 0x269   :  { %1103 = vmatpush.msrb.mxu3 %v1021_v0  ;;  %1058 = vmatpush.msrb.mxu1 %v988_v4 }
 0x26a   :  { %1088 = vmatpush.msrb.mxu2 %v997_v12 }
 0x26b   :  { %1104 = vmatpush.msrb.mxu3 %v1020_v3  ;;  %1059 = vmatpush.msrb.mxu1 %v987_v8 }
 0x26c   :  { %1089 = vmatpush.msrb.mxu2 %v996_v15 }
 0x26d   :  { %1105 = vmatpush.msrb.mxu3 %v1019_v7  ;;  %1060 = vmatpush.msrb.mxu1 %v986_v11 }
 0x26e   :  { %1090 = vmatpush.msrb.mxu2 %v995_v18 }
 0x26f   :  { %1106 = vmatpush.msrb.mxu3 %v1018_v10  ;;  %1061 = vmatpush.msrb.mxu1 %v985_v14 }
 0x270   :  { %1091 = vmatpush.msrb.mxu2 %v994_v19 }
 0x271   :  { %1107 = vmatpush.msrb.mxu3 %v1017_v13  ;;  %1062 = vmatpush.msrb.mxu1 %v984_v16 }
 0x273   :  { %1108 = vmatpush.msrb.mxu3 %v1016_v6  ;;  %1063 = vmatpush.msrb.mxu1 %v983_v44 }
 0x275   :  { %1109 = vmatpush.msrb.mxu3 %v1015_v39  ;;  %1064 = vmatpush.msrb.mxu1 %v982_v17 }
 0x277   :  { %1110 = vmatpush.msrb.mxu3 %v1014_v20  ;;  %1065 = vmatpush.msrb.mxu1 %v981_v23 }
 0x279   :  { %1111 = vmatpush.msrb.mxu3 %v1013_v22  ;;  %1066 = vmatpush.msrb.mxu1 %v980_v25 }
 0x27b   :  { %1112 = vmatpush.msrb.mxu3 %v1012_v24  ;;  %1067 = vmatpush.msrb.mxu1 %v979_v27 }
 0x27d   :  { %1113 = vmatpush.msrb.mxu3 %v1011_v26  ;;  %1068 = vmatpush.msrb.mxu1 %v978_v28 }
 0x27f   :  { %1114 = vmatpush.msrb.mxu3 %v1010_v30 }
 0x2be   :  { %v798_v21 = vpop.f32.mrf.mxu0 }
 0x2bf   :  { %1046 = vmatmul.f32.vlgmr.msrb.gmra.mxu0 %v798_v21 }
 0x2d1   :  { %v844_v31 = vpop.f32.mrf.mxu2 }
 0x2d2   :  { %1092 = vmatmul.f32.vlgmr.msrb.gmra.mxu2 %v844_v31 }
 0x2d9   :  { %v867_v32 = vpop.f32.mrf.mxu3 }
 0x2da   :  { %1115 = vmatmul.f32.vlgmr.msrb.gmra.mxu3 %v867_v32 }
 0x2db   :  { %v936_v33 = vpop.f32.mrf.mxu2  ;;  %v821_v34 = vpop.f32.mrf.mxu1 }
 0x2dc   :  { %1095 = vmatmul.f32.gmra.mxu2 %v936_v33  ;;  %1069 = vmatmul.f32.vlgmr.msrb.gmra.mxu1 %v821_v34 }
 0x2dd   :  { %v890_v35 = vpop.f32.mrf.mxu0 }
 0x2de   :  { %1049 = vmatmul.f32.gmra.mxu0 %v890_v35 }
 0x2e1   :  { %v959_v36 = vpop.f32.mrf.mxu3 }
 0x2e2   :  { %1118 = vmatmul.f32.gmra.mxu3 %v959_v36 }
 0x2e3   :  { %v913_v37 = vpop.f32.mrf.mxu1 }
 0x2e4   :  { %1072 = vmatmul.f32.gmra.mxu1 %v913_v37 }
 0x33c   :  { %v1047_v40 = vpop.f32.mrf.mxu0 }
 0x33d   :  { %v1048_v41 = vadd.f32 %v1184_v38, %v1047_v40 }
 0x355   :  { %v1093_v43 = vpop.f32.mrf.mxu2 }
 0x359   :  { %v1070_v45 = vpop.f32.mrf.mxu1 }
 0x35a   :  { %v1071_v46 = vadd.f32 %v1070_v45, %v1048_v41 }
 0x35b   :  { %v1050_v29 = vpop.f32.mrf.mxu0 }
 0x35c   :  { %v1094_v47 = vadd.f32 %v1093_v43, %v1071_v46  ;;  %v1051_v48 = vadd.f32 %v1184_v38, %v1050_v29 }
 0x35d   :  { %v1116_v42 = vpop.f32.mrf.mxu3 }
 0x35e   :  { %v1117_v50 = vadd.f32 %v1116_v42, %v1094_v47 }
 0x35f   :  { %v1096_v53 = vpop.f32.mrf.mxu2 }
 0x360   :  { %1122 = vst [vmem:[%s1831_s5] sm:$0xff] %v1117_v50 }
 0x361   :  { %v1073_v49 = vpop.f32.mrf.mxu1 }
 0x362   :  { %v1074_v51 = vadd.f32 %v1073_v49, %v1051_v48 }
 0x364   :  { %v1097_v54 = vadd.f32 %v1096_v53, %v1074_v51 }
 0x365   :  { %v1119_v55 = vpop.f32.mrf.mxu3 }
 0x366   :  { %v1120_v56 = vadd.f32 %v1119_v55, %v1097_v54 }
 0x368   :  { %1123 = vst [vmem:[%s1831_s5 + $0x8] sm:$0xff] %v1120_v56 }

</bundles_post_ra>
